<compile_context>
chip_gen: v6e
topology: v6e:2x2x1
jax: 0.10.0
libtpu: 0.0.40
codegen_flags: <defaults>
</compile_context>

<pallas_src>
import functools

import jax
import jax.numpy as jnp
from jax.experimental import pallas as pl
from jax.experimental.pallas import tpu as pltpu


def _round_up(a: int, m: int) -> int:
    return ((a + m - 1) // m) * m


# ----------------------------------------------------------------------------
# Fused kernel: all K transforms + identity view + shared encoder, one batch tile
# ----------------------------------------------------------------------------
def _fused_kernel(is_mul, da_pad,
                  x_ref, w1t_ref, b1t_ref, w2t_ref, xpass_ref, b2t_ref,
                  w1e_ref, b1e_ref, w2e_ref, b2e_ref, out_ref):
    """Shapes (lane-padded to multiples of 128; MXU operands bf16, f32 accumulation):
      x_ref    : (tb, D)           bf16
      w1t_ref  : (D, KH_pad)       bf16  K transform heads, layer 1, packed on lanes
      b1t_ref  : (1, KH_pad)       f32
      w2t_ref  : (KH_pad, W2COLS)  bf16  layer 2, block-diagonal per head
      xpass_ref: (D, W2COLS)       bf16  identity/tile blocks (replaces concat/tile)
      b2t_ref  : (1, W2COLS)       f32
      w1e_ref  : (DA_pad, HA_pad)  bf16  encoder layer 1, kron(I_{K+1}, W1e), padded
      b1e_ref  : (1, HA_pad)       f32
      w2e_ref  : (HA_pad, ZA_pad)  bf16  encoder layer 2, kron(I_{K+1}, W2e), padded
      b2e_ref  : (1, ZA_pad)       f32
      out_ref  : (tb, ZA_pad)      f32   view v's encoding lives in lanes [v*Z,(v+1)*Z)
    """
    x = x_ref[...]                                                      # (tb, D) bf16

    # --- transform layer 1: all K heads in one MXU matmul --------------------
    h = jnp.dot(x, w1t_ref[...], preferred_element_type=jnp.float32) + b1t_ref[...]
    h = jnp.maximum(h, 0.0)                                             # (tb, KH_pad) f32

    # --- transform layer 2 + identity view, no concat / tile -----------------
    # Block-diag heads consume h; the x-pass identity blocks inject x (view 0) and
    # the residual / tiled copies of x directly as extra (cheap) MXU columns.
    y2 = (jnp.dot(h.astype(jnp.bfloat16), w2t_ref[...],
                  preferred_element_type=jnp.float32)
          + jnp.dot(x, xpass_ref[...], preferred_element_type=jnp.float32)
          + b2t_ref[...])                                               # (tb, W2COLS) f32

    if is_mul:
        # first half = [x | tile_K(x)], second half = gate logits; view 0's gate
        # logit carries a +40 bias so sigmoid == 1 and x passes through unchanged.
        x_all = y2[:, :da_pad] * jax.nn.sigmoid(y2[:, da_pad:])
    else:
        x_all = y2                                                      # (tb, DA_pad) f32

    # --- shared encoder over all K+1 views (block-diagonal weights) ----------
    he = (jnp.dot(x_all.astype(jnp.bfloat16), w1e_ref[...],
                  preferred_element_type=jnp.float32) + b1e_ref[...])
    he = jnp.maximum(he, 0.0)                                           # (tb, HA_pad) f32
    out_ref[...] = (jnp.dot(he.astype(jnp.bfloat16), w2e_ref[...],
                            preferred_element_type=jnp.float32)
                    + b2e_ref[...])                                     # (tb, ZA_pad) f32


# ----------------------------------------------------------------------------
# Module
# ----------------------------------------------------------------------------
class FeatNeutralAD:
    """JAX/Pallas re-implementation of FeatNeutralAD.forward.

    The transformation nets and the shared encoder produced by `model._make_nets`
    are realized as 2-layer MLPs (Linear -> ReLU -> Linear), initialized
    deterministically in-script. z_dim follows config['enc_zdim'] as in the spec.
    """

    def __init__(self, x_dim, config, key):
        self.num_trans = int(config['num_trans'])
        self.trans_type = config['trans_type']
        self.h_dim = int(config.get('hidden_dim', 32))
        self.z_dim = int(config['enc_zdim'])
        self.x_dim = int(x_dim)

        K, D, H, Z = self.num_trans, self.x_dim, self.h_dim, self.z_dim
        ks = jax.random.split(key, 8)
        s = 0.1
        # Reference (per-head / shared) f32 parameters — mirror the torch module.
        self.w1_t = jax.random.normal(ks[0], (K, D, H), jnp.float32) * s
        self.b1_t = jax.random.normal(ks[1], (K, 1, H), jnp.float32) * s
        self.w2_t = jax.random.normal(ks[2], (K, H, D), jnp.float32) * s
        self.b2_t = jax.random.normal(ks[3], (K, 1, D), jnp.float32) * s
        self.w1_e = jax.random.normal(ks[4], (D, H), jnp.float32) * s
        self.b1_e = jax.random.normal(ks[5], (1, H), jnp.float32) * s
        self.w2_e = jax.random.normal(ks[6], (H, Z), jnp.float32) * s
        self.b2_e = jax.random.normal(ks[7], (1, Z), jnp.float32) * s

        # ---- lane-padded packed / block-diagonal weight blocks (built once) ----
        # TODO(synk): this kron/block-diag packing scales as (K+1)^2*D*H elements; at
        # large K/D/H it exhausts v7x's 64 MiB VMEM — switch to views-on-sublanes with
        # shared small encoder weights before scaling the model dimensions up.
        KH, DA, HA, ZA = K * H, (K + 1) * D, (K + 1) * H, (K + 1) * Z
        self.KH_pad = _round_up(KH, 128)
        self.DA_pad = _round_up(DA, 128)
        self.HA_pad = _round_up(HA, 128)
        self.ZA_pad = _round_up(ZA, 128)
        self.ZA = ZA
        is_mul = self.trans_type == 'mul'
        W2COLS = 2 * self.DA_pad if is_mul else self.DA_pad

        f32, bf16 = jnp.float32, jnp.bfloat16
        eye_d = jnp.eye(D, dtype=f32)

        # Transform layer 1: K heads side by side on the lane axis, zero-padded.
        w1t = jnp.transpose(self.w1_t, (1, 0, 2)).reshape(D, KH)
        self.w1t_cat = jnp.zeros((D, self.KH_pad), f32).at[:, :KH].set(w1t).astype(bf16)
        self.b1t_cat = jnp.zeros((1, self.KH_pad), f32).at[:, :KH].set(
            self.b1_t.reshape(1, KH))

        # Transform layer 2: block-diagonal heads + identity "x-pass" blocks.
        blk = jax.scipy.linalg.block_diag(*[self.w2_t[k] for k in range(K)])  # (KH, K*D)
        w2t = jnp.zeros((self.KH_pad, W2COLS), f32)
        xps = jnp.zeros((D, W2COLS), f32)
        b2t = jnp.zeros((1, W2COLS), f32)
        if is_mul:
            half = self.DA_pad
            for v in range(K + 1):                       # linear half: [x | tile_K(x)]
                xps = xps.at[:, v * D:(v + 1) * D].set(eye_d)
            w2t = w2t.at[:KH, half + D:half + DA].set(blk)        # gate logits (views 1..K)
            b2t = b2t.at[:, half:half + D].set(40.0)              # view 0: sigmoid == 1
            b2t = b2t.at[:, half + D:half + DA].set(self.b2_t.reshape(1, K * D))
        else:
            w2t = w2t.at[:KH, D:DA].set(blk)
            b2t = b2t.at[:, D:DA].set(self.b2_t.reshape(1, K * D))
            xps = xps.at[:, 0:D].set(eye_d)                       # view 0 = x
            if self.trans_type == 'residual':
                for v in range(1, K + 1):                         # + x on every view
                    xps = xps.at[:, v * D:(v + 1) * D].set(eye_d)
        self.w2t_blk = w2t.astype(bf16)
        self.x_pass = xps.astype(bf16)
        self.b2t_cat = b2t

        # Shared encoder applied to all K+1 views at once: kron(I_{K+1}, W), padded.
        kw1 = jnp.kron(jnp.eye(K + 1, dtype=f32), self.w1_e)      # (DA, HA)
        kw2 = jnp.kron(jnp.eye(K + 1, dtype=f32), self.w2_e)      # (HA, ZA)
        self.w1e_blk = (jnp.zeros((self.DA_pad, self.HA_pad), f32)
                        .at[:DA, :HA].set(kw1).astype(bf16))
        self.b1e_cat = jnp.zeros((1, self.HA_pad), f32).at[:, :HA].set(
            jnp.tile(self.b1_e, (1, K + 1)))
        self.w2e_blk = (jnp.zeros((self.HA_pad, self.ZA_pad), f32)
                        .at[:HA, :ZA].set(kw2).astype(bf16))
        self.b2e_cat = jnp.zeros((1, self.ZA_pad), f32).at[:, :ZA].set(
            jnp.tile(self.b2_e, (1, K + 1)))

    def forward(self, x):
        x = x.astype(jnp.float32)        # torch .type(FloatTensor) semantics
        B, D = x.shape
        K, Z = self.num_trans, self.z_dim

        # Batch tiling: >=2 grid steps whenever B allows it (both v7x TensorCores get
        # work under the "parallel" semantic); tiles capped at 1024 rows (step overhead
        # amortized, total live VMEM still far under the scoped limit at these dims).
        if B > 8:
            tb = min(1024, _round_up(pl.cdiv(B, 2), 8))
        else:
            tb = B
        grid = (pl.cdiv(B, tb),)

        def resident(a):
            # Full-array block, constant index map -> resident in VMEM, one DMA.
            # (pl.Buffered(1) on these specs is a further VMEM knob for v7x.)
            return pl.BlockSpec(a.shape, lambda i: (0, 0))

        weights = (self.w1t_cat, self.b1t_cat, self.w2t_blk, self.x_pass,
                   self.b2t_cat, self.w1e_blk, self.b1e_cat, self.w2e_blk,
                   self.b2e_cat)

        out_pad = pl.pallas_call(
            functools.partial(_fused_kernel, self.trans_type == 'mul', self.DA_pad),
            out_shape=jax.ShapeDtypeStruct((B, self.ZA_pad), jnp.float32),
            grid=grid,
            in_specs=[pl.BlockSpec((tb, D), lambda i: (i, 0))]
                     + [resident(w) for w in weights],
            out_specs=pl.BlockSpec((tb, self.ZA_pad), lambda i: (i, 0)),
            compiler_params=pltpu.CompilerParams(
                dimension_semantics=("parallel",)),
        )(x.astype(jnp.bfloat16), *weights)

        # Lane-dense padded slab -> PyTorch layout (B, num_trans+1, z_dim).
        # Padded output lanes are exact zeros and are sliced off here.
        return out_pad[:, :self.ZA].reshape(B, K + 1, Z)

    __call__ = forward


# ----------------------------------------------------------------------------
# Pure-JAX per-view reference (bf16_ops=True mirrors the kernel's bf16 MXU operands)
# ----------------------------------------------------------------------------
def _reference(model, x, bf16_ops):
    hp = jax.lax.Precision.HIGHEST
    cast = ((lambda a: a.astype(jnp.bfloat16).astype(jnp.float32))
            if bf16_ops else (lambda a: a))
    xb = cast(x.astype(jnp.float32))
    views = [xb]
    for k in range(model.num_trans):
        h = jnp.maximum(jnp.dot(xb, cast(model.w1_t[k]), precision=hp)
                        + model.b1_t[k], 0.0)
        mask = jnp.dot(cast(h), cast(model.w2_t[k]), precision=hp) + model.b2_t[k]
        if model.trans_type == 'forward':
            views.append(mask)
        elif model.trans_type == 'mul':
            views.append(jax.nn.sigmoid(mask) * xb)
        else:  # residual
            views.append(mask + xb)
    outs = []
    for v in views:
        he = jnp.maximum(jnp.dot(cast(v), cast(model.w1_e), precision=hp)
                         + model.b1_e, 0.0)
        outs.append(jnp.dot(cast(he), cast(model.w2_e), precision=hp) + model.b2_e)
    return jnp.stack(outs, axis=1)


# ----------------------------------------------------------------------------
# Main
# ----------------------------------------------------------------------------
if __name__ == "__main__":
    key = jax.random.PRNGKey(0)
    k_param, k_x = jax.random.split(key)

    B, x_dim = 8, 16
    base_cfg = {'num_trans': 4, 'hidden_dim': 32, 'enc_zdim': 32}
    x = jax.random.normal(k_x, (B, x_dim), jnp.float32)

    for trans_type in ('residual', 'forward', 'mul'):
        cfg = dict(base_cfg, trans_type=trans_type)
        model = FeatNeutralAD(x_dim, cfg, k_param)

        zs = jax.block_until_ready(model(x))
        assert zs.shape == (B, cfg['num_trans'] + 1, cfg['enc_zdim']), zs.shape
        assert zs.dtype == jnp.float32

        # Tight check vs a reference using the same bf16 MXU operands (catches any
        # packing / block-diagonal bugs).
        ref_bf = _reference(model, x, bf16_ops=True)
        err_bf = float(jnp.max(jnp.abs(zs - ref_bf)))
        assert jnp.allclose(zs, ref_bf, atol=5e-3, rtol=5e-3), (trans_type, err_bf)

        # Loose check vs the original full-f32 module semantics (bf16 weight/operand
        # quantization accounts for the remaining difference).
        ref_f32 = _reference(model, x, bf16_ops=False)
        err_f32 = float(jnp.max(jnp.abs(zs - ref_f32)))
        assert jnp.allclose(zs, ref_f32, atol=3e-2, rtol=3e-2), (trans_type, err_f32)

    print("KERNEL_OK")
</pallas_src>

<mosaic_0001>
module attributes {stable_mosaic.version = 11 : i64} {
  func.func @_fused_kernel(%arg0: i32, %arg1: memref<8x16xbf16, #tpu.memory_space<vmem>>, %arg2: memref<16x128xbf16, #tpu.memory_space<vmem>>, %arg3: memref<1x128xf32, #tpu.memory_space<vmem>>, %arg4: memref<128x128xbf16, #tpu.memory_space<vmem>>, %arg5: memref<16x128xbf16, #tpu.memory_space<vmem>>, %arg6: memref<1x128xf32, #tpu.memory_space<vmem>>, %arg7: memref<128x256xbf16, #tpu.memory_space<vmem>>, %arg8: memref<1x256xf32, #tpu.memory_space<vmem>>, %arg9: memref<256x256xbf16, #tpu.memory_space<vmem>>, %arg10: memref<1x256xf32, #tpu.memory_space<vmem>>, %arg11: memref<8x256xf32, #tpu.memory_space<vmem>>) attributes {dimension_semantics = [#tpu.dimension_semantics<parallel>], iteration_bounds = array<i64: 1>, scalar_prefetch = 0 : i64, scratch_operands = 0 : i64, tpu.core_type = #tpu.core_type<tc>, window_params = [{transform_indices = @transform_0, window_bounds = array<i64: 8, 16>}, {pipeline_mode = #tpu.pipeline_mode<synchronous>, transform_indices = @transform_1, window_bounds = array<i64: 16, 128>}, {pipeline_mode = #tpu.pipeline_mode<synchronous>, transform_indices = @transform_2, window_bounds = array<i64: 1, 128>}, {pipeline_mode = #tpu.pipeline_mode<synchronous>, transform_indices = @transform_3, window_bounds = array<i64: 128, 128>}, {pipeline_mode = #tpu.pipeline_mode<synchronous>, transform_indices = @transform_4, window_bounds = array<i64: 16, 128>}, {pipeline_mode = #tpu.pipeline_mode<synchronous>, transform_indices = @transform_5, window_bounds = array<i64: 1, 128>}, {pipeline_mode = #tpu.pipeline_mode<synchronous>, transform_indices = @transform_6, window_bounds = array<i64: 128, 256>}, {pipeline_mode = #tpu.pipeline_mode<synchronous>, transform_indices = @transform_7, window_bounds = array<i64: 1, 256>}, {pipeline_mode = #tpu.pipeline_mode<synchronous>, transform_indices = @transform_8, window_bounds = array<i64: 256, 256>}, {pipeline_mode = #tpu.pipeline_mode<synchronous>, transform_indices = @transform_9, window_bounds = array<i64: 1, 256>}, {transform_indices = @transform_10, window_bounds = array<i64: 8, 256>}]} {
    %c0 = arith.constant 0 : index
    %c0_0 = arith.constant 0 : index
    %0 = vector.load %arg1[%c0, %c0_0] : memref<8x16xbf16, #tpu.memory_space<vmem>>, vector<8x16xbf16>
    %c0_1 = arith.constant 0 : index
    %c0_2 = arith.constant 0 : index
    %1 = vector.load %arg2[%c0_1, %c0_2] : memref<16x128xbf16, #tpu.memory_space<vmem>>, vector<16x128xbf16>
    %cst = arith.constant dense<0.000000e+00> : vector<8x128xf32>
    %2 = tpu.matmul %0, %1, %cst {dimension_numbers = #tpu.dot_dimension_numbers<[1], [0], [0], [1], [0, 0, 1, 1], [], []>} : vector<8x16xbf16>, vector<16x128xbf16>, vector<8x128xf32> -> vector<8x128xf32>
    %c0_3 = arith.constant 0 : index
    %c0_4 = arith.constant 0 : index
    %3 = vector.load %arg3[%c0_3, %c0_4] : memref<1x128xf32, #tpu.memory_space<vmem>>, vector<1x128xf32>
    %4 = vector.broadcast %3 : vector<1x128xf32> to vector<8x128xf32>
    %5 = arith.addf %2, %4 : vector<8x128xf32>
    %cst_5 = arith.constant 0.000000e+00 : f32
    %6 = vector.broadcast %cst_5 : f32 to vector<8x128xf32>
    %7 = arith.maximumf %5, %6 : vector<8x128xf32>
    %8 = arith.truncf %7 : vector<8x128xf32> to vector<8x128xbf16>
    %c0_6 = arith.constant 0 : index
    %c0_7 = arith.constant 0 : index
    %9 = vector.load %arg4[%c0_6, %c0_7] : memref<128x128xbf16, #tpu.memory_space<vmem>>, vector<128x128xbf16>
    %cst_8 = arith.constant dense<0.000000e+00> : vector<8x128xf32>
    %10 = tpu.matmul %8, %9, %cst_8 {dimension_numbers = #tpu.dot_dimension_numbers<[1], [0], [0], [1], [0, 0, 1, 1], [], []>} : vector<8x128xbf16>, vector<128x128xbf16>, vector<8x128xf32> -> vector<8x128xf32>
    %c0_9 = arith.constant 0 : index
    %c0_10 = arith.constant 0 : index
    %11 = vector.load %arg5[%c0_9, %c0_10] : memref<16x128xbf16, #tpu.memory_space<vmem>>, vector<16x128xbf16>
    %cst_11 = arith.constant dense<0.000000e+00> : vector<8x128xf32>
    %12 = tpu.matmul %0, %11, %cst_11 {dimension_numbers = #tpu.dot_dimension_numbers<[1], [0], [0], [1], [0, 0, 1, 1], [], []>} : vector<8x16xbf16>, vector<16x128xbf16>, vector<8x128xf32> -> vector<8x128xf32>
    %13 = arith.addf %10, %12 : vector<8x128xf32>
    %c0_12 = arith.constant 0 : index
    %c0_13 = arith.constant 0 : index
    %14 = vector.load %arg6[%c0_12, %c0_13] : memref<1x128xf32, #tpu.memory_space<vmem>>, vector<1x128xf32>
    %15 = vector.broadcast %14 : vector<1x128xf32> to vector<8x128xf32>
    %16 = arith.addf %13, %15 : vector<8x128xf32>
    %17 = arith.truncf %16 : vector<8x128xf32> to vector<8x128xbf16>
    %c0_14 = arith.constant 0 : index
    %c0_15 = arith.constant 0 : index
    %18 = vector.load %arg7[%c0_14, %c0_15] : memref<128x256xbf16, #tpu.memory_space<vmem>>, vector<128x256xbf16>
    %cst_16 = arith.constant dense<0.000000e+00> : vector<8x256xf32>
    %19 = tpu.matmul %17, %18, %cst_16 {dimension_numbers = #tpu.dot_dimension_numbers<[1], [0], [0], [1], [0, 0, 1, 1], [], []>} : vector<8x128xbf16>, vector<128x256xbf16>, vector<8x256xf32> -> vector<8x256xf32>
    %c0_17 = arith.constant 0 : index
    %c0_18 = arith.constant 0 : index
    %20 = vector.load %arg8[%c0_17, %c0_18] : memref<1x256xf32, #tpu.memory_space<vmem>>, vector<1x256xf32>
    %21 = vector.broadcast %20 : vector<1x256xf32> to vector<8x256xf32>
    %22 = arith.addf %19, %21 : vector<8x256xf32>
    %cst_19 = arith.constant 0.000000e+00 : f32
    %23 = vector.broadcast %cst_19 : f32 to vector<8x256xf32>
    %24 = arith.maximumf %22, %23 : vector<8x256xf32>
    %25 = arith.truncf %24 : vector<8x256xf32> to vector<8x256xbf16>
    %c0_20 = arith.constant 0 : index
    %c0_21 = arith.constant 0 : index
    %26 = vector.load %arg9[%c0_20, %c0_21] : memref<256x256xbf16, #tpu.memory_space<vmem>>, vector<256x256xbf16>
    %cst_22 = arith.constant dense<0.000000e+00> : vector<8x256xf32>
    %27 = tpu.matmul %25, %26, %cst_22 {dimension_numbers = #tpu.dot_dimension_numbers<[1], [0], [0], [1], [0, 0, 1, 1], [], []>} : vector<8x256xbf16>, vector<256x256xbf16>, vector<8x256xf32> -> vector<8x256xf32>
    %c0_23 = arith.constant 0 : index
    %c0_24 = arith.constant 0 : index
    %28 = vector.load %arg10[%c0_23, %c0_24] : memref<1x256xf32, #tpu.memory_space<vmem>>, vector<1x256xf32>
    %29 = vector.broadcast %28 : vector<1x256xf32> to vector<8x256xf32>
    %30 = arith.addf %27, %29 : vector<8x256xf32>
    %c0_25 = arith.constant 0 : index
    %c0_26 = arith.constant 0 : index
    %31 = vector.load %arg11[%c0_25, %c0_26] : memref<8x256xf32, #tpu.memory_space<vmem>>, vector<8x256xf32>
    tpu.vector_store %arg11[%c0_25, %c0_26], %30 {strides = array<i32>} : memref<8x256xf32, #tpu.memory_space<vmem>>, vector<8x256xf32>,
    return
  }
  func.func @transform_0(%arg0: i32) -> (i32, i32) {
    %c0_i32 = arith.constant 0 : i32
    %c0_i32_0 = arith.constant 0 : i32
    return %arg0, %c0_i32 : i32, i32
  }
  func.func @transform_1(%arg0: i32) -> (i32, i32) {
    %c0_i32 = arith.constant 0 : i32
    %c0_i32_0 = arith.constant 0 : i32
    %c0_i32_1 = arith.constant 0 : i32
    return %c0_i32, %c0_i32_0 : i32, i32
  }
  func.func @transform_2(%arg0: i32) -> (i32, i32) {
    %c0_i32 = arith.constant 0 : i32
    %c0_i32_0 = arith.constant 0 : i32
    %c0_i32_1 = arith.constant 0 : i32
    return %c0_i32, %c0_i32_0 : i32, i32
  }
  func.func @transform_3(%arg0: i32) -> (i32, i32) {
    %c0_i32 = arith.constant 0 : i32
    %c0_i32_0 = arith.constant 0 : i32
    %c0_i32_1 = arith.constant 0 : i32
    return %c0_i32, %c0_i32_0 : i32, i32
  }
  func.func @transform_4(%arg0: i32) -> (i32, i32) {
    %c0_i32 = arith.constant 0 : i32
    %c0_i32_0 = arith.constant 0 : i32
    %c0_i32_1 = arith.constant 0 : i32
    return %c0_i32, %c0_i32_0 : i32, i32
  }
  func.func @transform_5(%arg0: i32) -> (i32, i32) {
    %c0_i32 = arith.constant 0 : i32
    %c0_i32_0 = arith.constant 0 : i32
    %c0_i32_1 = arith.constant 0 : i32
    return %c0_i32, %c0_i32_0 : i32, i32
  }
  func.func @transform_6(%arg0: i32) -> (i32, i32) {
    %c0_i32 = arith.constant 0 : i32
    %c0_i32_0 = arith.constant 0 : i32
    %c0_i32_1 = arith.constant 0 : i32
    return %c0_i32, %c0_i32_0 : i32, i32
  }
  func.func @transform_7(%arg0: i32) -> (i32, i32) {
    %c0_i32 = arith.constant 0 : i32
    %c0_i32_0 = arith.constant 0 : i32
    %c0_i32_1 = arith.constant 0 : i32
    return %c0_i32, %c0_i32_0 : i32, i32
  }
  func.func @transform_8(%arg0: i32) -> (i32, i32) {
    %c0_i32 = arith.constant 0 : i32
    %c0_i32_0 = arith.constant 0 : i32
    %c0_i32_1 = arith.constant 0 : i32
    return %c0_i32, %c0_i32_0 : i32, i32
  }
  func.func @transform_9(%arg0: i32) -> (i32, i32) {
    %c0_i32 = arith.constant 0 : i32
    %c0_i32_0 = arith.constant 0 : i32
    %c0_i32_1 = arith.constant 0 : i32
    return %c0_i32, %c0_i32_0 : i32, i32
  }
  func.func @transform_10(%arg0: i32) -> (i32, i32) {
    %c0_i32 = arith.constant 0 : i32
    %c0_i32_0 = arith.constant 0 : i32
    return %arg0, %c0_i32 : i32, i32
  }
}

</mosaic_0001>

<bundles_post_ra>
// kernel: tpu_custom_call.1
= control target key start
LH: loop header
LB: loop body
LE: loop exit
PB: predicated region body
PF: predicated region fallthrough
CT: control target
= control target key end

     0   :  { %15 = vsyncpa [#allocation3], 0  ;;  %s1228_s0 = inlined_call_operand.hbm [shape: bf16[8,16], index: 0, kind: input, shape index: {}]   ;;  %s1229_s1 = inlined_call_operand.hbm [shape: bf16[16,128], index: 1, kind: input, shape index: {}]   ;;  %s1230_s2 = inlined_call_operand.vmem [shape: f32[1,128], index: 2, kind: input, shape index: {}]   ;;  %s1231_s3 = inlined_call_operand.hbm [shape: bf16[128,128], index: 3, kind: input, shape index: {}]   ;;  %s1232_s4 = inlined_call_operand.hbm [shape: bf16[16,128], index: 4, kind: input, shape index: {}]   ;;  %s1233_s5 = inlined_call_operand.vmem [shape: f32[1,128], index: 5, kind: input, shape index: {}]   ;;  %s1234_s6 = inlined_call_operand.hbm [shape: bf16[128,256], index: 6, kind: input, shape index: {}]   ;;  %s1235_s7 = inlined_call_operand.vmem [shape: f32[1,256], index: 7, kind: input, shape index: {}]   ;;  %s1236_s8 = inlined_call_operand.hbm [shape: bf16[256,256], index: 8, kind: input, shape index: {}]   ;;  %s1237_s9 = inlined_call_operand.vmem [shape: f32[1,256], index: 9, kind: input, shape index: {}]   ;;  %s1238_s10 = inlined_call_operand.hbm [shape: f32[8,256], index: 10, kind: output, shape index: {}]  }
   0x1   :  { %16 = vsyncpa [#allocation6], 0 }
   0x2   :  { %17 = vsyncpa [#allocation9], 0 }
   0x3   :  { %18 = vsyncpa [#allocation12], 0 }
   0x4   :  { %19 = vsyncpa [#allocation4], 0  ;;  %s1111_s13 = smov [#allocation5]  }
   0x5   :  { %s35_s14 = sshll.u32 %s1111_s13, 4  ;;  %s36_s14 = int_to_ptr.vmem [resolvable:$true] %s35_s14 }
   0x6   :  { %s969_s15 = scalar_lea.vmem %s36_s14, 128  ;;  %p974_p1 = scmp.lt.s32.totalorder %s36_s14, %s36_s14 }
   0x7   :  { %p970_p0 = scmp.ne.s32.totalorder %s36_s14, %s969_s15  ;;  %p975_p2 = scmp.lt.s32.totalorder %s969_s15, %s969_s15 }
   0x9   :  { %p976_p3 = por %p975_p2, %p974_p1 }
   0xb   :  { %p977_p4 = pnand %p976_p3, %p970_p0 }
   0xd   :  { %980 = shalt.err (!%p977_p4)
}
   0xe   :  { %s1112_s16 = smov 64   ;;  %s1113_s17 = smov 4  }
   0xf   :  { %41 = dma.hbm_to_vmem [thread:$0]  %s1229_s1, 128, %s36_s14, [#allocation6], %s1112_s16, %s1112_s16, %s1113_s17  }
  0x10   :  { %s1114_s20 = smov [#allocation8]   ;;  %s1115_s22 = smov [#allocation2]  }
  0x11   :  { %s61_s21 = sshll.u32 %s1114_s20, 4  ;;  %s26_s23 = sshll.u32 %s1115_s22, 4  ;;  %s62_s21 = int_to_ptr.vmem [resolvable:$true] %s61_s21  ;;  %s27_s23 = int_to_ptr.vmem [resolvable:$true] %s26_s23 }
  0x12   :  { %s989_s24 = scalar_lea.vmem %s62_s21, 128  ;;  %p994_p6 = scmp.lt.s32.totalorder %s62_s21, %s62_s21 }
  0x13   :  { %p990_p5 = scmp.ne.s32.totalorder %s62_s21, %s989_s24  ;;  %p995_p7 = scmp.lt.s32.totalorder %s989_s24, %s989_s24 }
  0x15   :  { %p996_p8 = por %p995_p7, %p994_p6 }
  0x17   :  { %p997_p9 = pnand %p996_p8, %p990_p5 }
  0x19   :  { %1000 = shalt.err (!%p997_p9)
}
  0x1a   :  { %67 = dma.hbm_to_vmem [thread:$0]  %s1232_s4, 128, %s62_s21, [#allocation9], %s1112_s16, %s1112_s16, %s1113_s17  }
  0x1b   :  { %s1009_s1 = scalar_lea.vmem %s27_s23, 64  ;;  %p1014_p11 = scmp.lt.s32.totalorder %s27_s23, %s27_s23 }
  0x1c   :  { %p1010_p10 = scmp.ne.s32.totalorder %s27_s23, %s1009_s1  ;;  %p1015_p12 = scmp.lt.s32.totalorder %s1009_s1, %s1009_s1 }
  0x1e   :  { %p1016_p13 = por %p1015_p12, %p1014_p11 }
  0x20   :  { %p1017_p0 = pnand %p1016_p13, %p1010_p10 }
  0x22   :  { %1020 = shalt.err (!%p1017_p0)
}
  0x23   :  { %29 = dma.hbm_to_vmem [thread:$0]  %s1228_s0, 64, %s27_s23, [#allocation3]  }
  0x24   :  { %s1116_s29 = smov [#allocation7]   ;;  %s1117_s11 = smov [#allocation10]  }
  0x25   :  { %s49_s30 = sshll.u32 %s1116_s29, 4  ;;  %s75_s12 = sshll.u32 %s1117_s11, 4  ;;  %s50_s30 = int_to_ptr.vmem [resolvable:$true] %s49_s30  ;;  %s76_s12 = int_to_ptr.vmem [resolvable:$true] %s75_s12 }
  0x26   :  { %s1029_s13 = scalar_lea.vmem %s50_s30, 1024  ;;  %p1034_p2 = scmp.lt.s32.totalorder %s50_s30, %s50_s30 }
  0x27   :  { %p1030_p1 = scmp.ne.s32.totalorder %s50_s30, %s1029_s13  ;;  %p1035_p3 = scmp.lt.s32.totalorder %s1029_s13, %s1029_s13 }
  0x29   :  { %p1036_p4 = por %p1035_p3, %p1034_p2 }
  0x2b   :  { %p1037_p5 = pnand %p1036_p4, %p1030_p1 }
  0x2d   :  { %1040 = shalt.err (!%p1037_p5)
}
  0x2e   :  { %55 = dma.hbm_to_vmem [thread:$0]  %s1231_s3, 1024, %s50_s30, [#allocation6], %s1112_s16, %s1112_s16, %s1113_s17  }
  0x2f   :  { %s1049_s0 = scalar_lea.vmem %s76_s12, 2048  ;;  %p1054_p7 = scmp.lt.s32.totalorder %s76_s12, %s76_s12 }
  0x30   :  { %p1050_p6 = scmp.ne.s32.totalorder %s76_s12, %s1049_s0  ;;  %p1055_p8 = scmp.lt.s32.totalorder %s1049_s0, %s1049_s0 }
  0x32   :  { %p1056_p9 = por %p1055_p8, %p1054_p7 }
  0x34   :  { %p1057_p10 = pnand %p1056_p9, %p1050_p6 }
  0x36   :  { %1060 = shalt.err (!%p1057_p10)
}
  0x37   :  { %s1118_s15 = smov 128   ;;  %s1119_s18 = smov 8  }
  0x38   :  { %81 = dma.hbm_to_vmem [thread:$0]  %s1234_s6, 2048, %s76_s12, [#allocation9], %s1118_s15, %s1118_s15, %s1119_s18  }
  0x39   :  { %s1120_s21 = smov [#allocation11]  }
  0x3a   :  { %s89_s22 = sshll.u32 %s1120_s21, 4  ;;  %s90_s22 = int_to_ptr.vmem [resolvable:$true] %s89_s22 }
  0x3b   :  { %s1069_s23 = scalar_lea.vmem %s90_s22, 4096  ;;  %p1074_p12 = scmp.lt.s32.totalorder %s90_s22, %s90_s22 }
  0x3c   :  { %p1070_p11 = scmp.ne.s32.totalorder %s90_s22, %s1069_s23  ;;  %p1075_p13 = scmp.lt.s32.totalorder %s1069_s23, %s1069_s23 }
  0x3e   :  { %p1076_p0 = por %p1075_p13, %p1074_p12 }
  0x40   :  { %p1077_p1 = pnand %p1076_p0, %p1070_p11 }
  0x42   :  { %1080 = shalt.err (!%p1077_p1)
}
  0x43   :  { %95 = dma.hbm_to_vmem [thread:$0]  %s1236_s8, 4096, %s90_s22, [#allocation12], %s1118_s15, %s1118_s15, %s1119_s18  }
  0x44   :  { %1101 = dma.done.wait [#allocation3], 64  }
  0x45   :  { %1102 = vsyncadd [#allocation3], 4294967232 }
  0x46   :  { %1103 = dma.done.wait [#allocation6], 1152  }
  0x47   :  { %1104 = vsyncadd [#allocation6], 4294966144 }
  0x48   :  { %1105 = dma.done.wait [#allocation9], 2176  }
  0x49   :  { %1106 = vsyncadd [#allocation9], 4294965120 }
  0x4a   :  { %1107 = dma.done.wait [#allocation12], 4096  }
  0x4b   :  { %1108 = vsyncadd [#allocation12], 4294963200  ;;  %v1121_v0 = vmov 0.0   ;;  %vm1122_vm0 = vmmov 0   ;;  %v879_v1 = vld [vmem:[#allocation5] sm:$0xff]   ;;  %vm133_vm1 = vcmask 130048  }
  0x4c   :  { %833 = vmatprep.subr.bf16.mxu0 %v1121_v0  ;;  %835 = vmatprep.mubr.msk.bf16.mxu0 %vm1122_vm0, %v1121_v0  ;;  %v117_v2 = vld [vmem:[#allocation2] sm:$0xf]  ;;  %v880_v3 = vld [vmem:[#allocation8] sm:$0xff]   ;;  %v881_v4 = vld [vmem:[#allocation7 + $0x38] sm:$0xff]   ;;  %v1123_v40 = vmov 0  }
  0x4d   :  { %839 = vmatprep.subr.bf16.mxu1 %v1121_v0  ;;  %841 = vmatprep.mubr.msk.bf16.mxu1 %vm1122_vm0, %v1121_v0  ;;  %v882_v5 = vld [vmem:[#allocation7 + $0x30] sm:$0xff]   ;;  %v883_v6 = vld [vmem:[#allocation7 + $0x28] sm:$0xff]   ;;  %v884_v7 = vld [vmem:[#allocation7 + $0x20] sm:$0xff]  }
  0x4e   :  { %834 = vmatpush3.bf16.msra.mxu0 %v879_v1  ;;  %840 = vmatpush3.bf16.msra.mxu1 %v880_v3  ;;  %v885_v8 = vld [vmem:[#allocation7 + $0x18] sm:$0xff]   ;;  %v886_v9 = vld [vmem:[#allocation7 + $0x10] sm:$0xff]   ;;  %v887_v10 = vld [vmem:[#allocation7 + $0x8] sm:$0xff]  }
  0x4f   :  { %845 = vmatprep.subr.bf16.mxu1 %v1121_v0  ;;  %v888_v11 = vld [vmem:[#allocation7] sm:$0xff]   ;;  %v758_v13 = vld [vmem:[%s1230_s2] ss:$0 sm:$0xff]  ;;  %v892_v27 = vld [vmem:[#allocation10 + $0x60] ss:$8 sps:$4 sm:$0xff]  }
  0x50   :  { %v891_v12 = vld [vmem:[#allocation10 + $0x74] ss:$8 sps:$4 sm:$0xff]   ;;  %v889_v21 = vld [vmem:[#allocation10 + $0x70] ss:$8 sps:$4 sm:$0xff]   ;;  %v894_v23 = vld [vmem:[#allocation10 + $0x64] ss:$8 sps:$4 sm:$0xff]  }
  0x51   :  { %836 = vmatmul.mubr.msk.bf16.vlgmr.msra.gmra.mxu0 %vm133_vm1, %v117_v2  ;;  %842 = vmatmul.mubr.msk.bf16.vlgmr.msra.gmra.mxu1 %vm133_vm1, %v117_v2  ;;  %v897_v28 = vld [vmem:[#allocation10 + $0x54] ss:$8 sps:$4 sm:$0xff]   ;;  %v895_v29 = vld [vmem:[#allocation10 + $0x50] ss:$8 sps:$4 sm:$0xff]   ;;  %v900_v30 = vld [vmem:[#allocation10 + $0x44] ss:$8 sps:$4 sm:$0xff]  }
  0x52   :  { %846 = vmatpush3.bf16.msra.mxu1 %v881_v4  ;;  %861 = vmatprep.mubr.msk.bf16.mxu1 %vm1122_vm0, %v1121_v0  ;;  %v898_v31 = vld [vmem:[#allocation10 + $0x40] ss:$8 sps:$4 sm:$0xff]   ;;  %v903_v32 = vld [vmem:[#allocation10 + $0x34] ss:$8 sps:$4 sm:$0xff]   ;;  %v901_v33 = vld [vmem:[#allocation10 + $0x30] ss:$8 sps:$4 sm:$0xff]  }
  0x53   :  { %847 = vmatprep.subr.bf16.mxu1 %v1121_v0  ;;  %v906_v34 = vld [vmem:[#allocation10 + $0x24] ss:$8 sps:$4 sm:$0xff]   ;;  %v904_v35 = vld [vmem:[#allocation10 + $0x20] ss:$8 sps:$4 sm:$0xff]   ;;  %v909_v36 = vld [vmem:[#allocation10 + $0x14] ss:$8 sps:$4 sm:$0xff]  }
  0x54   :  { %v907_v37 = vld [vmem:[#allocation10 + $0x10] ss:$8 sps:$4 sm:$0xff]   ;;  %v912_v38 = vld [vmem:[#allocation10 + $0x4] ss:$8 sps:$4 sm:$0xff]   ;;  %v910_v39 = vld [vmem:[#allocation10] ss:$8 sps:$4 sm:$0xff]  }
  0x55   :  { %v913_v41 = vld [vmem:[#allocation11 + $0x70] ss:$8 sps:$4 sm:$0xff]   ;;  %v915_v42 = vld [vmem:[#allocation11 + $0x74] ss:$8 sps:$4 sm:$0xff]   ;;  %v918_v43 = vld [vmem:[#allocation11 + $0x64] ss:$8 sps:$4 sm:$0xff]  }
  0x56   :  { %848 = vmatpush3.bf16.msra.mxu1 %v882_v5  ;;  %697 = vmatprep.subr.bf16.mxu0 %v915_v42  ;;  %v916_v44 = vld [vmem:[#allocation11 + $0x60] ss:$8 sps:$4 sm:$0xff]   ;;  %v921_v45 = vld [vmem:[#allocation11 + $0x54] ss:$8 sps:$4 sm:$0xff]   ;;  %v919_v46 = vld [vmem:[#allocation11 + $0x50] ss:$8 sps:$4 sm:$0xff]  }
  0x57   :  { %849 = vmatprep.subr.bf16.mxu1 %v1121_v0  ;;  %698 = vmatpush1.bf16.msra.mxu0 %v913_v41  ;;  %v924_v47 = vld [vmem:[#allocation11 + $0x44] ss:$8 sps:$4 sm:$0xff]   ;;  %v922_v48 = vld [vmem:[#allocation11 + $0x40] ss:$8 sps:$4 sm:$0xff]   ;;  %v927_v49 = vld [vmem:[#allocation11 + $0x34] ss:$8 sps:$4 sm:$0xff]  }
  0x58   :  { %699 = vmatprep.subr.bf16.mxu0 %v918_v43  ;;  %v925_v50 = vld [vmem:[#allocation11 + $0x30] ss:$8 sps:$4 sm:$0xff]   ;;  %v930_v51 = vld [vmem:[#allocation11 + $0x24] ss:$8 sps:$4 sm:$0xff]   ;;  %v928_v52 = vld [vmem:[#allocation11 + $0x20] ss:$8 sps:$4 sm:$0xff]  }
  0x59   :  { %v933_v53 = vld [vmem:[#allocation11 + $0x14] ss:$8 sps:$4 sm:$0xff]   ;;  %v931_v54 = vld [vmem:[#allocation11 + $0x10] ss:$8 sps:$4 sm:$0xff]   ;;  %v936_v55 = vld [vmem:[#allocation11 + $0x4] ss:$8 sps:$4 sm:$0xff]  }
  0x5a   :  { %850 = vmatpush3.bf16.msra.mxu1 %v883_v6  ;;  %v934_v56 = vld [vmem:[#allocation11] ss:$8 sps:$4 sm:$0xff]   ;;  %v939_v57 = vld [vmem:[#allocation11 + $0xf4] ss:$8 sps:$4 sm:$0xff]   ;;  %v937_v58 = vld [vmem:[#allocation11 + $0xf0] ss:$8 sps:$4 sm:$0xff]  }
  0x5b   :  { %851 = vmatprep.subr.bf16.mxu1 %v1121_v0  ;;  %700 = vmatpush1.bf16.msra.mxu0 %v916_v44  ;;  %v942_v59 = vld [vmem:[#allocation11 + $0xe4] ss:$8 sps:$4 sm:$0xff]   ;;  %v940_v60 = vld [vmem:[#allocation11 + $0xe0] ss:$8 sps:$4 sm:$0xff]   ;;  %v945_v61 = vld [vmem:[#allocation11 + $0xd4] ss:$8 sps:$4 sm:$0xff]  }
  0x5c   :  { %701 = vmatprep.subr.bf16.mxu0 %v921_v45  ;;  %v943_v62 = vld [vmem:[#allocation11 + $0xd0] ss:$8 sps:$4 sm:$0xff]   ;;  %v948_v63 = vld [vmem:[#allocation11 + $0xc4] ss:$8 sps:$4 sm:$0xff]   ;;  %v951_v1 = vld [vmem:[#allocation11 + $0xb4] ss:$8 sps:$4 sm:$0xff]  }
  0x5d   :  { %v949_v2 = vld [vmem:[#allocation11 + $0xb0] ss:$8 sps:$4 sm:$0xff]   ;;  %v954_v3 = vld [vmem:[#allocation11 + $0xa4] ss:$8 sps:$4 sm:$0xff]   ;;  %v952_v4 = vld [vmem:[#allocation11 + $0xa0] ss:$8 sps:$4 sm:$0xff]  }
  0x5e   :  { %852 = vmatpush3.bf16.msra.mxu1 %v884_v7  ;;  %v771_v6 = vld [vmem:[%s1233_s5] ss:$0 sm:$0xff] }
  0x5f   :  { %853 = vmatprep.subr.bf16.mxu1 %v1121_v0  ;;  %702 = vmatpush1.bf16.msra.mxu0 %v919_v46 }
  0x60   :  { %703 = vmatprep.subr.bf16.mxu0 %v924_v47 }
  0x62   :  { %854 = vmatpush3.bf16.msra.mxu1 %v885_v8 }
  0x63   :  { %855 = vmatprep.subr.bf16.mxu1 %v1121_v0  ;;  %704 = vmatpush1.bf16.msra.mxu0 %v922_v48 }
  0x64   :  { %705 = vmatprep.subr.bf16.mxu0 %v927_v49 }
  0x66   :  { %856 = vmatpush3.bf16.msra.mxu1 %v886_v9 }
  0x67   :  { %857 = vmatprep.subr.bf16.mxu1 %v1121_v0  ;;  %706 = vmatpush1.bf16.msra.mxu0 %v925_v50 }
  0x68   :  { %707 = vmatprep.subr.bf16.mxu0 %v930_v51 }
  0x6a   :  { %858 = vmatpush3.bf16.msra.mxu1 %v887_v10 }
  0x6b   :  { %859 = vmatprep.subr.bf16.mxu1 %v1121_v0  ;;  %708 = vmatpush1.bf16.msra.mxu0 %v928_v52  ;;  %v946_v0 = vld [vmem:[#allocation11 + $0xc0] ss:$8 sps:$4 sm:$0xff]  }
  0x6c   :  { %709 = vmatprep.subr.bf16.mxu0 %v933_v53 }
  0x6e   :  { %860 = vmatpush3.bf16.msra.mxu1 %v888_v11 }
  0x6f   :  { %448 = vmatprep.subr.bf16.mxu1 %v891_v12  ;;  %710 = vmatpush1.bf16.msra.mxu0 %v931_v54 }
  0x70   :  { %711 = vmatprep.subr.bf16.mxu0 %v936_v55 }
  0x73   :  { %712 = vmatpush1.bf16.msra.mxu0 %v934_v56 }
  0x74   :  { %713 = vmatprep.subr.bf16.mxu0 %v939_v57 }
  0x77   :  { %714 = vmatpush2.bf16.msra.mxu0 %v937_v58 }
  0x78   :  { %715 = vmatprep.subr.bf16.mxu0 %v942_v59 }
  0x7b   :  { %716 = vmatpush2.bf16.msra.mxu0 %v940_v60 }
  0x7c   :  { %717 = vmatprep.subr.bf16.mxu0 %v945_v61 }
  0x7f   :  { %718 = vmatpush2.bf16.msra.mxu0 %v943_v62 }
  0x80   :  { %719 = vmatprep.subr.bf16.mxu0 %v948_v63 }
  0x83   :  { %720 = vmatpush2.bf16.msra.mxu0 %v946_v0 }
  0x84   :  { %721 = vmatprep.subr.bf16.mxu0 %v951_v1 }
  0x87   :  { %722 = vmatpush2.bf16.msra.mxu0 %v949_v2 }
  0x88   :  { %723 = vmatprep.subr.bf16.mxu0 %v954_v3 }
  0x8b   :  { %724 = vmatpush2.bf16.msra.mxu0 %v952_v4 }
 0x111   :  { %v171_v14 = vpop.f32.mrf.mxu0  ;;  %v1213_v17 = vpop.f32.mrf.mxu1 }
 0x112   :  { %v172_v15 = vadd.f32 %v758_v13, %v171_v14  ;;  %v957_v13 = vld [vmem:[#allocation11 + $0x94] ss:$8 sps:$4 sm:$0xff]   ;;  %v955_v14 = vld [vmem:[#allocation11 + $0x90] ss:$8 sps:$4 sm:$0xff]  }
 0x113   :  { %v837_v16 = vpop.f32.mrf.mxu0  ;;  %v843_v20 = vpop.f32.mrf.mxu1  ;;  %725 = vmatprep.subr.bf16.mxu0 %v957_v13 }
 0x114   :  { %v177_v18 = vmax.f32 %v172_v15, 0.0  ;;  %726 = vmatpush2.bf16.msra.mxu0 %v955_v14  ;;  %v960_v15 = vld [vmem:[#allocation11 + $0x84] ss:$8 sps:$4 sm:$0xff]   ;;  %v958_v16 = vld [vmem:[#allocation11 + $0x80] ss:$8 sps:$4 sm:$0xff]  }
 0x115   :  { %v174_v19 = vpop.f32.mrf.mxu0  ;;  %v240_v25 = vpop.f32.mrf.mxu1  ;;  %727 = vmatprep.subr.bf16.mxu0 %v960_v15 }
 0x116   :  { %v178_v22 = vpack.c.bf16 %v177_v18, %v177_v18  ;;  %v358_v18 = vlaneseq }
 0x117   :  { %v838_v24 = vpop.f32.mrf.mxu0  ;;  %v844_v26 = vpop.f32.mrf.mxu1 }
 0x118   :  { %862 = vmatmul.mubr.bf16.vlgmr.msra.gmra.mxu1 %v178_v22  ;;  %728 = vmatpush2.bf16.msra.mxu0 %v958_v16  ;;  %v359_v19 = vshrl.u32 %v358_v18, 7 }
 0x119   :  { %449 = vmatpush1.bf16.msra.mxu1 %v889_v21  ;;  %480 = vmatprep.mubr.bf16.mxu1 %v1123_v40 }
 0x11a   :  { %450 = vmatprep.subr.bf16.mxu1 %v894_v23  ;;  %v360_v20 = vsub.s32 0, %v359_v19  ;;  %v364_v21 = vsub.s32 1, %v359_v19 }
 0x11d   :  { %451 = vmatpush1.bf16.msra.mxu1 %v892_v27 }
 0x11e   :  { %452 = vmatprep.subr.bf16.mxu1 %v897_v28 }
 0x121   :  { %453 = vmatpush1.bf16.msra.mxu1 %v895_v29 }
 0x122   :  { %454 = vmatprep.subr.bf16.mxu1 %v900_v30 }
 0x125   :  { %455 = vmatpush1.bf16.msra.mxu1 %v898_v31 }
 0x126   :  { %456 = vmatprep.subr.bf16.mxu1 %v903_v32 }
 0x129   :  { %457 = vmatpush1.bf16.msra.mxu1 %v901_v33 }
 0x12a   :  { %458 = vmatprep.subr.bf16.mxu1 %v906_v34  ;;  %v525_v34 = vld [vmem:[%s1237_s9] sm:$0x3] }
 0x12d   :  { %459 = vmatpush1.bf16.msra.mxu1 %v904_v35  ;;  %v530_v35 = vrot.slane %v525_v34, %v360_v20 }
 0x12e   :  { %460 = vmatprep.subr.bf16.mxu1 %v909_v36  ;;  %v534_v36 = vrot.slane %v525_v34, %v364_v21 }
 0x131   :  { %461 = vmatpush1.bf16.msra.mxu1 %v907_v37 }
 0x132   :  { %462 = vmatprep.subr.bf16.mxu1 %v912_v38 }
 0x135   :  { %463 = vmatpush1.bf16.msra.mxu1 %v910_v39 }
 0x1d8   :  { %v325_v5 = vpop.f32.mrf.mxu1 }
 0x1d9   :  { %v326_v7 = vadd.f32 %v325_v5, %v1213_v17  ;;  %v356_v17 = vld [vmem:[%s1235_s7] sm:$0x3]  ;;  %s1124_s7 = smov [#allocation13]  }
 0x1da   :  { %v863_v8 = vpop.f32.mrf.mxu1  ;;  %v361_v22 = vrot.slane %v356_v17, %v360_v20  ;;  %v365_v23 = vrot.slane %v356_v17, %v364_v21  ;;  %s746_s1 = sshll.u32 %s1124_s7, 4  ;;  %s747_s1 = int_to_ptr.vmem [resolvable:$true] %s746_s1 }
 0x1db   :  { %v338_v9 = vadd.f32 %v771_v6, %v326_v7  ;;  %s1081_s27 = scalar_lea.vmem %s747_s1, 256  ;;  %p1086_p3 = scmp.lt.s32.totalorder %s747_s1, %s747_s1 }
 0x1dc   :  { %v328_v10 = vpop.f32.mrf.mxu1  ;;  %p1082_p2 = scmp.ne.s32.totalorder %s747_s1, %s1081_s27  ;;  %p1087_p4 = scmp.lt.s32.totalorder %s1081_s27, %s1081_s27 }
 0x1dd   :  { %v339_v11 = vpack.c.bf16 %v338_v9, %v338_v9 }
 0x1de   :  { %v864_v12 = vpop.f32.mrf.mxu1  ;;  %p1088_p5 = por %p1087_p4, %p1086_p3 }
 0x1df   :  { %481 = vmatmul.mubr.bf16.vlgmr.msra.gmra.mxu1 %v339_v11 }
 0x1e0   :  { %p1089_p6 = pnand %p1088_p5, %p1082_p2 }
 0x29f   :  { %v482_v24 = vpop.f32.mrf.mxu1 }
 0x2a0   :  { %v483_v25 = vadd.f32 %v482_v24, %v361_v22 }
 0x2a1   :  { %v484_v26 = vpop.f32.mrf.mxu1 }
 0x2a2   :  { %v485_v27 = vadd.f32 %v484_v26, %v365_v23  ;;  %v489_v28 = vmax.f32 %v483_v25, 0.0 }
 0x2a3   :  { %v486_v29 = vpop.f32.mrf.mxu1 }
 0x2a4   :  { %v490_v30 = vmax.f32 %v485_v27, 0.0  ;;  %v491_v33 = vpack.c.bf16 %v489_v28, %v489_v28 }
 0x2a5   :  { %v487_v31 = vpop.f32.mrf.mxu1 }
 0x2a6   :  { %v492_v32 = vpack.c.bf16 %v490_v30, %v490_v30 }
 0x2a8   :  { %729 = vmatprep.mubr.bf16.mxu0 %v492_v32 }
 0x2a9   :  { %730 = vmatmul.mubr.bf16.vlgmr.msra.gmra.mxu0 %v491_v33 }
 0x369   :  { %v731_v37 = vpop.f32.mrf.mxu0 }
 0x36a   :  { %v732_v38 = vadd.f32 %v731_v37, %v530_v35 }
 0x36b   :  { %v733_v39 = vpop.f32.mrf.mxu0 }
 0x36c   :  { %738 = vst [vmem:[#allocation13] sm:$0xff] %v732_v38  ;;  %v734_v40 = vadd.f32 %v733_v39, %v534_v36 }
 0x36d   :  { %v735_v41 = vpop.f32.mrf.mxu0 }
 0x36e   :  { %739 = vst [vmem:[#allocation13 + $0x8] sm:$0xff] %v734_v40 }
 0x36f   :  { %v736_v42 = vpop.f32.mrf.mxu0 }
 0x370   :  { %1092 = shalt.err (!%p1089_p6)
}
 0x371   :  { %749 = dma.vmem_to_hbm [thread:$0]  %s747_s1, 256, %s1238_s10, [#allocation4]  }
 0x372   :  { %1109 = dma.done.wait [#allocation4], 256  }
 0x373   :  { %1110 = vsyncadd [#allocation4], 4294967040 }
 0x374   :  { %753 = vsyncpa [#allocation3], 1 }
 0x375   :  { %754 = vsyncpa [#allocation6], 1 }
 0x376   :  { %755 = vsyncpa [#allocation9], 1 }
 0x377   :  { %756 = vsyncpa [#allocation12], 1 }
 0x378   :  { %757 = vsyncpa [#allocation4], 1 }

</bundles_post_ra>
